<compile_context>
chip_gen: v7x
topology: tpu7x:2x2x1
jax: 0.10.0
libtpu: 0.0.40
codegen_flags: <defaults>
</compile_context>

<pallas_src>
import functools
import math

import jax
import jax.numpy as jnp
from jax.experimental import pallas as pl
from jax.experimental.pallas import tpu as pltpu


_BLOCK_BYTES = 2 * 1024 * 1024        # ~2 MiB per pipeline block buffer
_MAX_LANE_BYTES = 32 * 1024           # <=32 KiB contiguous bytes per row per DMA
_VMEM_LIMIT_BYTES = 32 * 1024 * 1024  # explicit scoped-VMEM budget (safe on v5e/v6e/v7x)

_PARAMS = pltpu.CompilerParams(
    dimension_semantics=("parallel", "parallel"),
    vmem_limit_bytes=_VMEM_LIMIT_BYTES,
)


def _cdiv(a, b):
    return -(-a // b)


def _round_up(x, m):
    return _cdiv(x, m) * m


def _sublane_multiple(dtype):
    itemsize = jnp.dtype(dtype).itemsize
    return max(8, 32 // max(itemsize, 1))   # 8 f32, 16 bf16, 32 int8


def _split_sizes(total, split_size_or_sections):
    """Reproduce torch.split size semantics."""
    if isinstance(split_size_or_sections, int):
        s = split_size_or_sections
        assert s > 0, "split_size must be positive"
        sizes = [s] * (total // s)
        if total % s:
            sizes.append(total % s)
        return sizes
    sizes = list(split_size_or_sections)
    assert sum(sizes) == total, "sections must sum to dim size"
    return sizes


def _largest_aligned_block(offset, cap, unit):
    """Largest b with unit | b, b | offset (or any b if offset==0), b <= cap.

    Returns None if no such b exists (offset not a multiple of `unit`)."""
    if cap < unit:
        return None
    if offset == 0:
        return (cap // unit) * unit
    if offset % unit:
        return None
    m = offset // unit
    cap_d = cap // unit
    best = 1
    k = 1
    while k * k <= m:
        if m % k == 0:
            for d in (k, m // k):
                if best < d <= cap_d:
                    best = d
        k += 1
    return best * unit


def _pick_row_tile(n_rows, block_cols, sub, itemsize):
    """Row-block size: byte-budget sized, (8,128)-legal, and <= ~n_rows/2 so the
    grid keeps >=2 parallel steps (v7x megacore) whenever rows can be split."""
    if n_rows <= sub:
        return n_rows                                   # full extent: always legal
    budget_rows = max(sub, (_BLOCK_BYTES // max(block_cols * itemsize, 1)) // sub * sub)
    half = max(sub, _round_up(_cdiv(n_rows, 2), sub))   # <= n_rows when n_rows > sub
    return min(budget_rows, half)


# --------------------------------------------------------------------------
# Kernels (pure copies; this op is HBM-bandwidth bound).
# --------------------------------------------------------------------------

def _copy_block_kernel(x_ref, o_ref, *, ow):
    # Aligned path: BlockSpec already selected the section's column window.
    o_ref[...] = x_ref[:, :ow]


def _shifted_copy_kernel(a_ref, b_ref, o_ref, *, shift, ow):
    # Unaligned path: a_ref/b_ref are the two adjacent 128-multiple input
    # blocks covering the window; do the residual lane shift in-kernel.
    ab = jnp.concatenate([a_ref[...], b_ref[...]], axis=1)
    o_ref[...] = ab[:, shift:shift + ow]


def _copy_row_kernel(x_ref, o_ref):
    o_ref[...] = x_ref[...]


# --------------------------------------------------------------------------
# Section copies.
# --------------------------------------------------------------------------

def _copy_col_window(x2d, c0, w):
    """Copy columns [c0, c0 + w) of x2d (shape (R, C)) into a new (R, w) array."""
    R, C = x2d.shape
    dtype = x2d.dtype
    itemsize = jnp.dtype(dtype).itemsize
    sub = _sublane_multiple(dtype)

    # Lane-block cap: byte budget per row, never wider than the (padded) section
    # or the array itself (full-width blocks are legal for any C).
    cap_cb = min(_MAX_LANE_BYTES // itemsize, _round_up(w, 128))
    if cap_cb > C:
        cap_cb = C

    if c0 == 0:
        cb_aligned = cap_cb
    elif cap_cb >= 128:
        cb_aligned = _largest_aligned_block(c0, cap_cb, 128)
    else:
        cb_aligned = None

    # Prefer the 1x-read pure path unless alignment forces tiny (<1 KiB) runs.
    use_pure = cb_aligned is not None and (
        cb_aligned >= cap_cb or cb_aligned * itemsize >= 1024)

    if use_pure:
        cb = cb_aligned
        ncol = _cdiv(w, cb)
        ow = cb if ncol > 1 else w          # lane-dense out blocks, or full width
        rt = _pick_row_tile(R, cb, sub, itemsize)
        base = c0 // cb
        return pl.pallas_call(
            functools.partial(_copy_block_kernel, ow=ow),
            out_shape=jax.ShapeDtypeStruct((R, w), dtype),
            grid=(_cdiv(R, rt), ncol),
            in_specs=[pl.BlockSpec((rt, cb), lambda i, j, b=base: (i, b + j))],
            out_specs=pl.BlockSpec((rt, ow), lambda i, j: (i, j)),
            compiler_params=_PARAMS,
        )(x2d)

    # Shifted two-block path (c0 not expressible as a 128-multiple block start).
    cb = cap_cb
    shift = c0 % cb
    ncol = _cdiv(w, cb)
    ow = cb if ncol > 1 else w
    rt = _pick_row_tile(R, cb, sub, itemsize)
    base = c0 // cb
    last_blk = (C - 1) // cb                # clamp: a fully-OOB "next" block is never used
    return pl.pallas_call(
        functools.partial(_shifted_copy_kernel, shift=shift, ow=ow),
        out_shape=jax.ShapeDtypeStruct((R, w), dtype),
        grid=(_cdiv(R, rt), ncol),
        in_specs=[
            pl.BlockSpec((rt, cb), lambda i, j, b=base: (i, b + j)),
            pl.BlockSpec((rt, cb),
                         lambda i, j, b=base, lb=last_blk: (i, jnp.minimum(b + j + 1, lb))),
        ],
        out_specs=pl.BlockSpec((rt, ow), lambda i, j: (i, j)),
        compiler_params=_PARAMS,
    )(x2d, x2d)


def _copy_row_window(x2d, r0, h):
    """Copy rows [r0, r0 + h) of x2d (shape (R, C)) into a new (h, C) array.

    Returns None if r0 cannot be expressed as a sublane-aligned block start
    (caller falls back to the column-window path)."""
    R, C = x2d.shape
    dtype = x2d.dtype
    itemsize = jnp.dtype(dtype).itemsize
    sub = _sublane_multiple(dtype)

    cb = min(_MAX_LANE_BYTES // itemsize, _round_up(C, 128))
    if cb > C:
        cb = C

    budget_rows = max(sub, (_BLOCK_BYTES // max(cb * itemsize, 1)) // sub * sub)
    cap_rb = max(sub, min((h // sub) * sub, budget_rows))
    rb = _largest_aligned_block(r0, cap_rb, sub)
    if rb is None:
        return None

    nrow, ncol = _cdiv(h, rb), _cdiv(C, cb)
    if nrow * ncol == 1 and h > sub:        # keep >=2 parallel steps for v7x when possible
        smaller = _largest_aligned_block(r0, max(sub, _round_up(_cdiv(h, 2), sub)), sub)
        if smaller:
            rb = smaller
            nrow = _cdiv(h, rb)

    base = r0 // rb
    return pl.pallas_call(
        _copy_row_kernel,
        out_shape=jax.ShapeDtypeStruct((h, C), dtype),
        grid=(nrow, ncol),
        in_specs=[pl.BlockSpec((rb, cb), lambda i, j, b=base: (b + i, j))],
        out_specs=pl.BlockSpec((rb, cb), lambda i, j: (i, j)),
        compiler_params=_PARAMS,
    )(x2d)


# --------------------------------------------------------------------------
# torch.split equivalent.
# --------------------------------------------------------------------------

def pallas_split(x, split_size_or_sections, dim=0):
    """Equivalent of torch.split(x, split_size_or_sections, dim) on TPU."""
    dim = dim % x.ndim
    shape = x.shape
    split_len = shape[dim]
    sizes = _split_sizes(split_len, split_size_or_sections)

    prefix = math.prod(shape[:dim])
    suffix = math.prod(shape[dim + 1:])
    sub = _sublane_multiple(x.dtype)

    # Pure reshapes of a contiguous array (no data movement, no transpose).
    x_cols = x.reshape(prefix, split_len * suffix)
    x_rows = x.reshape(split_len, suffix) if prefix == 1 else None

    # TODO(synk): for splits producing many tiny sections, batch all sections
    # into one pallas_call (pl.ANY outputs + SMEM offset table) to amortize the
    # per-call dispatch/pipeline-warmup cost.
    outs = []
    off = 0
    for sz in sizes:
        out_shape = shape[:dim] + (sz,) + shape[dim + 1:]
        if sz == 0 or prefix == 0 or suffix == 0 or split_len == 0:
            outs.append(jnp.zeros(out_shape, x.dtype))
            off += sz
            continue
        out2d = None
        if x_rows is not None and suffix >= 128 and sz >= sub:
            out2d = _copy_row_window(x_rows, off, sz)       # sublane-dense dim-0 path
        if out2d is None:
            out2d = _copy_col_window(x_cols, off * suffix, sz * suffix)
        outs.append(out2d.reshape(out_shape))
        off += sz
    return tuple(outs)


class SplitPallas:
    """Mirror of the PyTorch Split module (no parameters)."""

    def __init__(self, split_size_or_sections, dim=0):
        self.split_size_or_sections = split_size_or_sections
        self.dim = dim
        # One jitted graph per input shape: all per-section pallas_calls are
        # dispatched together (removes Python/dispatch overhead between sections).
        self._fn = jax.jit(
            lambda v: pallas_split(v, self.split_size_or_sections, self.dim))

    def __call__(self, val):
        return self._fn(val)


if __name__ == "__main__":
    key = jax.random.PRNGKey(0)
    k1, k2, k3 = jax.random.split(key, 3)

    # Case 1: integer split size along channel dim (NCHW-like), aligned columns.
    x = jax.random.normal(k1, (2, 4, 16, 16), dtype=jnp.float32)
    outs = jax.block_until_ready(SplitPallas(2, dim=1)(x))
    refs = (x[:, 0:2], x[:, 2:4])
    assert len(outs) == 2
    for o, r in zip(outs, refs):
        assert o.shape == r.shape and o.dtype == r.dtype
        assert bool(jnp.array_equal(o, r))

    # Case 2: list-of-sections split along dim 1.
    outs = jax.block_until_ready(SplitPallas([1, 3], dim=1)(x))
    refs = (x[:, 0:1], x[:, 1:4])
    assert len(outs) == 2
    for o, r in zip(outs, refs):
        assert o.shape == r.shape and o.dtype == r.dtype
        assert bool(jnp.array_equal(o, r))

    # Case 3: split along dim 0 with tiny sections (prefix == 1 -> column path).
    outs = jax.block_until_ready(SplitPallas(1, dim=0)(x))
    assert len(outs) == 2
    for i, o in enumerate(outs):
        assert o.shape == (1, 4, 16, 16)
        assert bool(jnp.array_equal(o, x[i:i + 1]))

    # Case 4: non-128-aligned column offsets (exercises the shifted two-block path).
    y = jax.random.normal(k2, (16, 10, 13), dtype=jnp.float32)
    outs = jax.block_until_ready(SplitPallas([3, 7], dim=1)(y))
    refs = (y[:, 0:3], y[:, 3:10])
    for o, r in zip(outs, refs):
        assert o.shape == r.shape and o.dtype == r.dtype
        assert bool(jnp.array_equal(o, r))

    # Case 5: dim-0 split of a 2-D array (exercises the sublane-dense row path).
    z = jax.random.normal(k3, (32, 256), dtype=jnp.float32)
    outs = jax.block_until_ready(SplitPallas(16, dim=0)(z))
    refs = (z[0:16], z[16:32])
    for o, r in zip(outs, refs):
        assert o.shape == r.shape and o.dtype == r.dtype
        assert bool(jnp.array_equal(o, r))

    print("KERNEL_OK")
</pallas_src>

<mosaic_0001>
module attributes {stable_mosaic.version = 11 : i64} {
  func.func @_copy_block_kernel(%arg0: i32, %arg1: i32, %arg2: memref<2x512xf32, #tpu.memory_space<vmem>>, %arg3: memref<2x512xf32, #tpu.memory_space<vmem>>) attributes {dimension_semantics = [#tpu.dimension_semantics<parallel>, #tpu.dimension_semantics<parallel>], iteration_bounds = array<i64: 1, 1>, scalar_prefetch = 0 : i64, scratch_operands = 0 : i64, tpu.core_type = #tpu.core_type<tc>, window_params = [{transform_indices = @transform_0, window_bounds = array<i64: 2, 512>}, {transform_indices = @transform_1, window_bounds = array<i64: 2, 512>}]} {
    %c0 = arith.constant 0 : index
    %c0_0 = arith.constant 0 : index
    %0 = vector.load %arg2[%c0, %c0_0] : memref<2x512xf32, #tpu.memory_space<vmem>>, vector<2x512xf32>
    %c0_1 = arith.constant 0 : index
    %c0_2 = arith.constant 0 : index
    %1 = vector.load %arg3[%c0_1, %c0_2] : memref<2x512xf32, #tpu.memory_space<vmem>>, vector<2x512xf32>
    tpu.vector_store %arg3[%c0_1, %c0_2], %0 {strides = array<i32>} : memref<2x512xf32, #tpu.memory_space<vmem>>, vector<2x512xf32>,
    return
  }
  func.func @transform_0(%arg0: i32, %arg1: i32) -> (i32, i32) {
    %c0_i32 = arith.constant 0 : i32
    %0 = arith.addi %c0_i32, %arg1 : i32
    %c0_i32_0 = arith.constant 0 : i32
    return %arg0, %0 : i32, i32
  }
  func.func @transform_1(%arg0: i32, %arg1: i32) -> (i32, i32) {
    %c0_i32 = arith.constant 0 : i32
    return %arg0, %arg1 : i32, i32
  }
}

module attributes {stable_mosaic.version = 11 : i64} {
  func.func @_copy_block_kernel(%arg0: i32, %arg1: i32, %arg2: memref<2x512xf32, #tpu.memory_space<vmem>>, %arg3: memref<2x512xf32, #tpu.memory_space<vmem>>) attributes {dimension_semantics = [#tpu.dimension_semantics<parallel>, #tpu.dimension_semantics<parallel>], iteration_bounds = array<i64: 1, 1>, scalar_prefetch = 0 : i64, scratch_operands = 0 : i64, tpu.core_type = #tpu.core_type<tc>, window_params = [{transform_indices = @transform_0, window_bounds = array<i64: 2, 512>}, {transform_indices = @transform_1, window_bounds = array<i64: 2, 512>}]} {
    %c0 = arith.constant 0 : index
    %c0_0 = arith.constant 0 : index
    %0 = vector.load %arg2[%c0, %c0_0] : memref<2x512xf32, #tpu.memory_space<vmem>>, vector<2x512xf32>
    %c0_1 = arith.constant 0 : index
    %c0_2 = arith.constant 0 : index
    %1 = vector.load %arg3[%c0_1, %c0_2] : memref<2x512xf32, #tpu.memory_space<vmem>>, vector<2x512xf32>
    tpu.vector_store %arg3[%c0_1, %c0_2], %0 {strides = array<i32>} : memref<2x512xf32, #tpu.memory_space<vmem>>, vector<2x512xf32>,
    return
  }
  func.func @transform_0(%arg0: i32, %arg1: i32) -> (i32, i32) {
    %c1_i32 = arith.constant 1 : i32
    %0 = arith.addi %c1_i32, %arg1 : i32
    %c0_i32 = arith.constant 0 : i32
    return %arg0, %0 : i32, i32
  }
  func.func @transform_1(%arg0: i32, %arg1: i32) -> (i32, i32) {
    %c0_i32 = arith.constant 0 : i32
    return %arg0, %arg1 : i32, i32
  }
}

</mosaic_0001>

<bundles_post_ra>
// kernel: _lambda_.2
= control target key start
LH: loop header
LB: loop body
LE: loop exit
PB: predicated region body
PF: predicated region fallthrough
CT: control target
= control target key end

     0   :  { %s30_s0 = inlined_call_operand.vmem [shape: f32[2,1024], index: 0, kind: input, shape index: {}]   ;;  %s31_s1 = inlined_call_operand.vmem [shape: f32[2,512], index: 1, kind: output, shape index: {}]  }
   0x1   :  { %v8_v0 = vld [vmem:[%s30_s0] sm:$0xff] }
   0x2   :  { %9 = vst [vmem:[%s31_s1] sm:$0xff] %v8_v0 }

// kernel: _lambda_.3
= control target key start
LH: loop header
LB: loop body
LE: loop exit
PB: predicated region body
PF: predicated region fallthrough
CT: control target
= control target key end

     0   :  { %s59_s0 = inlined_call_operand.vmem [shape: f32[2,1024], index: 0, kind: input, shape index: {}]   ;;  %s60_s1 = inlined_call_operand.vmem [shape: f32[2,512], index: 1, kind: output, shape index: {}]  }
   0x1   :  { %v42_v0 = vld [vmem:[%s59_s0 + $0x8] sm:$0xff] }
   0x2   :  { %31 = vst [vmem:[%s60_s1] sm:$0xff] %v42_v0 }

</bundles_post_ra>
